<compile_context>
chip_gen: v6e
topology: v6e:2x2x1
jax: 0.10.0
libtpu: 0.0.40
codegen_flags: <defaults>
</compile_context>

<pallas_src>
import jax
import jax.numpy as jnp
from jax.experimental import pallas as pl
from jax.experimental.pallas import tpu as pltpu


def _hbm_copy_kernel(x_ref, o_ref, sem):
    # Single HBM->HBM DMA: start and wait on one transfer of the whole array.
    cp = pltpu.make_async_copy(x_ref, o_ref, sem)
    cp.start()
    cp.wait()


def _lane_dense_2d(total: int) -> tuple[int, int]:
    """Factor `total` as (rows<=8, cols) with the large extent last."""
    for r in (8, 7, 6, 5, 4, 3, 2):
        if total % r == 0:
            return r, total // r
    return 1, total


@jax.jit
def contiguous_pallas(x: jax.Array) -> jax.Array:
    """Pallas equivalent of torch.Tensor.contiguous() (identity copy).

    Note: the zero-cost implementation is `return x`; the DMA kernel below is
    kept only because the exercise mandates an explicit Pallas copy.
    """
    orig_shape = x.shape
    rows, cols = _lane_dense_2d(x.size)          # e.g. 34496 -> (8, 4312)
    x2d = x.reshape(rows, cols)

    out2d = pl.pallas_call(
        _hbm_copy_kernel,
        out_shape=jax.ShapeDtypeStruct((rows, cols), x.dtype),
        # Raw HBM refs on both sides: no auto-DMA into VMEM, no blocking.
        in_specs=[pl.BlockSpec(memory_space=pl.ANY)],
        out_specs=pl.BlockSpec(memory_space=pl.ANY),
        scratch_shapes=[pltpu.SemaphoreType.DMA(())],
        grid=(),
    )(x2d)

    return out2d.reshape(orig_shape)


if __name__ == "__main__":
    key = jax.random.PRNGKey(0)
    # Same shape as the reference module's input: [1, 352, 2, 7, 7]
    x316 = jax.random.normal(key, (1, 352, 2, 7, 7), dtype=jnp.float32)

    x317 = contiguous_pallas(x316)
    jax.block_until_ready(x317)

    assert x317.shape == x316.shape
    assert x317.dtype == x316.dtype
    assert bool(jnp.all(x317 == x316))

    print("KERNEL_OK")
</pallas_src>

<mosaic_0001>
module attributes {stable_mosaic.version = 11 : i64} {
  func.func @_hbm_copy_kernel(%arg0: memref<8x4312xf32, #tpu.memory_space<any>>, %arg1: memref<8x4312xf32, #tpu.memory_space<any>>, %arg2: memref<!tpu.dma_semaphore, #tpu.memory_space<semaphore_mem>>) attributes {dimension_semantics = [], scalar_prefetch = 0 : i64, scratch_operands = 1 : i64, tpu.core_type = #tpu.core_type<tc>} {
    tpu.enqueue_dma source(%arg0 : memref<8x4312xf32, #tpu.memory_space<any>>) target(%arg1 : memref<8x4312xf32, #tpu.memory_space<any>>) target_semaphore(%arg2 : memref<!tpu.dma_semaphore, #tpu.memory_space<semaphore_mem>>)
    tpu.wait_dma2 semaphore(%arg2 : memref<!tpu.dma_semaphore, #tpu.memory_space<semaphore_mem>>) src(%arg0 : memref<8x4312xf32, #tpu.memory_space<any>>) dst(%arg1 : memref<8x4312xf32, #tpu.memory_space<any>>)
    return
  }
}

</mosaic_0001>

<bundles_post_ra>
// kernel: contiguous_pallas.1
= control target key start
LH: loop header
LB: loop body
LE: loop exit
PB: predicated region body
PF: predicated region fallthrough
CT: control target
= control target key end

     0   :  { %s350_s0 = inlined_call_operand.vmem [shape: f32[8,4312], index: 0, kind: input, shape index: {}]   ;;  %s351_s1 = inlined_call_operand.vmem [shape: f32[8,4312], index: 1, kind: output, shape index: {}]  }
   0x1   :  { %v39_v0 = vld [vmem:[%s350_s0] sm:$0xff]  ;;  %v41_v1 = vld [vmem:[%s350_s0 + $0x8] sm:$0xff]  ;;  %v43_v2 = vld [vmem:[%s350_s0 + $0x10] sm:$0xff] }
   0x2   :  { %40 = vst [vmem:[%s351_s1] sm:$0xff] %v39_v0  ;;  %42 = vst [vmem:[%s351_s1 + $0x8] sm:$0xff] %v41_v1  ;;  %v45_v3 = vld [vmem:[%s350_s0 + $0x18] sm:$0xff]  ;;  %v47_v4 = vld [vmem:[%s350_s0 + $0x20] sm:$0xff] }
   0x3   :  { %44 = vst [vmem:[%s351_s1 + $0x10] sm:$0xff] %v43_v2  ;;  %v49_v5 = vld [vmem:[%s350_s0 + $0x28] sm:$0xff]  ;;  %46 = vst [vmem:[%s351_s1 + $0x18] sm:$0xff] %v45_v3  ;;  %v51_v6 = vld [vmem:[%s350_s0 + $0x30] sm:$0xff] }
   0x4   :  { %48 = vst [vmem:[%s351_s1 + $0x20] sm:$0xff] %v47_v4  ;;  %50 = vst [vmem:[%s351_s1 + $0x28] sm:$0xff] %v49_v5  ;;  %v53_v7 = vld [vmem:[%s350_s0 + $0x38] sm:$0xff]  ;;  %v55_v8 = vld [vmem:[%s350_s0 + $0x40] sm:$0xff] }
   0x5   :  { %52 = vst [vmem:[%s351_s1 + $0x30] sm:$0xff] %v51_v6  ;;  %54 = vst [vmem:[%s351_s1 + $0x38] sm:$0xff] %v53_v7  ;;  %v57_v9 = vld [vmem:[%s350_s0 + $0x48] sm:$0xff]  ;;  %v59_v10 = vld [vmem:[%s350_s0 + $0x50] sm:$0xff] }
   0x6   :  { %56 = vst [vmem:[%s351_s1 + $0x40] sm:$0xff] %v55_v8  ;;  %v61_v11 = vld [vmem:[%s350_s0 + $0x58] sm:$0xff]  ;;  %58 = vst [vmem:[%s351_s1 + $0x48] sm:$0xff] %v57_v9  ;;  %v63_v12 = vld [vmem:[%s350_s0 + $0x60] sm:$0xff] }
   0x7   :  { %60 = vst [vmem:[%s351_s1 + $0x50] sm:$0xff] %v59_v10  ;;  %62 = vst [vmem:[%s351_s1 + $0x58] sm:$0xff] %v61_v11  ;;  %v65_v13 = vld [vmem:[%s350_s0 + $0x68] sm:$0xff]  ;;  %v67_v14 = vld [vmem:[%s350_s0 + $0x70] sm:$0xff] }
   0x8   :  { %64 = vst [vmem:[%s351_s1 + $0x60] sm:$0xff] %v63_v12  ;;  %66 = vst [vmem:[%s351_s1 + $0x68] sm:$0xff] %v65_v13  ;;  %v69_v15 = vld [vmem:[%s350_s0 + $0x78] sm:$0xff]  ;;  %v71_v16 = vld [vmem:[%s350_s0 + $0x80] sm:$0xff] }
   0x9   :  { %68 = vst [vmem:[%s351_s1 + $0x70] sm:$0xff] %v67_v14  ;;  %v73_v17 = vld [vmem:[%s350_s0 + $0x88] sm:$0xff]  ;;  %70 = vst [vmem:[%s351_s1 + $0x78] sm:$0xff] %v69_v15  ;;  %v75_v18 = vld [vmem:[%s350_s0 + $0x90] sm:$0xff] }
   0xa   :  { %72 = vst [vmem:[%s351_s1 + $0x80] sm:$0xff] %v71_v16  ;;  %74 = vst [vmem:[%s351_s1 + $0x88] sm:$0xff] %v73_v17  ;;  %v77_v19 = vld [vmem:[%s350_s0 + $0x98] sm:$0xff]  ;;  %v79_v20 = vld [vmem:[%s350_s0 + $0xa0] sm:$0xff] }
   0xb   :  { %76 = vst [vmem:[%s351_s1 + $0x90] sm:$0xff] %v75_v18  ;;  %78 = vst [vmem:[%s351_s1 + $0x98] sm:$0xff] %v77_v19  ;;  %v81_v21 = vld [vmem:[%s350_s0 + $0xa8] sm:$0xff]  ;;  %v83_v22 = vld [vmem:[%s350_s0 + $0xb0] sm:$0xff] }
   0xc   :  { %80 = vst [vmem:[%s351_s1 + $0xa0] sm:$0xff] %v79_v20  ;;  %v85_v23 = vld [vmem:[%s350_s0 + $0xb8] sm:$0xff]  ;;  %82 = vst [vmem:[%s351_s1 + $0xa8] sm:$0xff] %v81_v21  ;;  %v87_v24 = vld [vmem:[%s350_s0 + $0xc0] sm:$0xff] }
   0xd   :  { %84 = vst [vmem:[%s351_s1 + $0xb0] sm:$0xff] %v83_v22  ;;  %86 = vst [vmem:[%s351_s1 + $0xb8] sm:$0xff] %v85_v23  ;;  %v89_v25 = vld [vmem:[%s350_s0 + $0xc8] sm:$0xff]  ;;  %v91_v26 = vld [vmem:[%s350_s0 + $0xd0] sm:$0xff] }
   0xe   :  { %88 = vst [vmem:[%s351_s1 + $0xc0] sm:$0xff] %v87_v24  ;;  %90 = vst [vmem:[%s351_s1 + $0xc8] sm:$0xff] %v89_v25  ;;  %v93_v27 = vld [vmem:[%s350_s0 + $0xd8] sm:$0xff]  ;;  %v95_v28 = vld [vmem:[%s350_s0 + $0xe0] sm:$0xff] }
   0xf   :  { %92 = vst [vmem:[%s351_s1 + $0xd0] sm:$0xff] %v91_v26  ;;  %v97_v29 = vld [vmem:[%s350_s0 + $0xe8] sm:$0xff]  ;;  %94 = vst [vmem:[%s351_s1 + $0xd8] sm:$0xff] %v93_v27  ;;  %v99_v30 = vld [vmem:[%s350_s0 + $0xf0] sm:$0xff] }
  0x10   :  { %96 = vst [vmem:[%s351_s1 + $0xe0] sm:$0xff] %v95_v28  ;;  %98 = vst [vmem:[%s351_s1 + $0xe8] sm:$0xff] %v97_v29  ;;  %v101_v31 = vld [vmem:[%s350_s0 + $0xf8] sm:$0xff]  ;;  %v103_v32 = vld [vmem:[%s350_s0 + $0x100] sm:$0xff] }
  0x11   :  { %100 = vst [vmem:[%s351_s1 + $0xf0] sm:$0xff] %v99_v30  ;;  %102 = vst [vmem:[%s351_s1 + $0xf8] sm:$0xff] %v101_v31  ;;  %v105_v33 = vld [vmem:[%s350_s0 + $0x108] sm:$0xff] }
  0x12   :  { %104 = vst [vmem:[%s351_s1 + $0x100] sm:$0xff] %v103_v32  ;;  %106 = vst [vmem:[%s351_s1 + $0x108] sm:$0xff] %v105_v33 }
  0x13   :  { %114 = vsyncadd [#allocation2], 4352 }
  0x14   :  { %134 = dma.done.wait [#allocation2], 4352 }
  0x15   :  { %135 = vsyncadd [#allocation2], 4294962944 }
  0x16   :  { %119 = vsyncmov [#allocation2] }
  0x19   :  { %s120_s26 = vpop.sfrf %119 }
  0x1a   :  { %p133_p0 = scmp.ne.s32.totalorder %s120_s26, 0 }
  0x1c   :  { %124 = shalt.err (%p133_p0)  }

</bundles_post_ra>
